<compile_context>
chip_gen: v5e
topology: v5e:2x2
jax: 0.10.0
libtpu: 0.0.40
codegen_flags: <defaults>
</compile_context>

<pallas_src>
import jax
import jax.numpy as jnp
from jax.experimental import pallas as pl
from jax.experimental.pallas import tpu as pltpu


def _round_up(x, m):
    return ((x + m - 1) // m) * m


def _choose_f_tile(F, H, w_itemsize, weight_budget_bytes):
    """Largest multiple of 128 dividing F whose double-buffered W1+W2 tiles fit the budget."""
    if F <= 512 or F % 128 != 0:
        return F                       # single F tile (must equal F when not 128-aligned)
    best = 128
    tf = 128
    while tf <= F:
        if F % tf == 0 and 4 * H * tf * w_itemsize <= weight_budget_bytes:
            best = tf
        tf += 128
    return best


def _pick_tiles(TK, E, H, F, act_itemsize, w_itemsize, vmem_cap):
    """Choose (tM, tF, vmem_limit_bytes) from the device VMEM capacity."""
    limit = int(vmem_cap * 0.9)
    headroom = 4 << 20
    if TK < 128:
        tM = max(_round_up(TK, 8), 8)
    else:
        # 1024 on 128 MiB parts (v5e/v6e) pushes past the weight-BW roofline; 512 on 64 MiB
        # v7x (already compute-bound there).  Bound by ~tokens-per-expert so fine-grained
        # routing does not inflate padding; floor 256 to keep weight reuse.
        cap = 1024 if vmem_cap >= 96 * 1024 * 1024 else 512
        balance = _round_up(max(TK // max(E, 1), 1), 128)
        tM = min(max(256, min(cap, balance)), _round_up(TK, 128))
    while True:
        # x/y double-buffered + f32 accumulator + gate column (double-buffered, tiny)
        fixed = tM * H * (4 * act_itemsize + 4) + 4 * tM * 4
        tF = _choose_f_tile(F, H, w_itemsize, limit - fixed - headroom)
        need = fixed + 4 * H * tF * w_itemsize + headroom
        if need <= limit or tM <= 128:
            break
        tM = _round_up(max(128, tM // 2), 128)
    vmem_limit = int(min(limit, max(need, 32 << 20)))
    return tM, tF, vmem_limit


def _grouped_mlp_kernel(tile_expert_ref, tile_valid_ref,          # scalar prefetch (SMEM)
                        x_ref, gate_ref, w1_ref, w2_ref,          # VMEM input tiles
                        y_ref,                                    # VMEM output tile
                        acc_ref):                                 # f32 scratch accumulator
    m = pl.program_id(0)
    f = pl.program_id(1)
    nf = pl.num_programs(1)
    valid = tile_valid_ref[m] == 1

    # Dead tiles (past the last routed group): keep their never-read output finite.
    @pl.when(jnp.logical_and(f == 0, jnp.logical_not(valid)))
    def _():
        acc_ref[...] = jnp.zeros_like(acc_ref)

    @pl.when(valid)
    def _():
        x = x_ref[...]
        h = jnp.dot(x, w1_ref[...], preferred_element_type=jnp.float32)      # (tM, tF) f32
        # TODO(synk): Megatron's default F.gelu is the exact erf variant; tanh approx here.
        h = jax.nn.gelu(h, approximate=True).astype(x.dtype)                 # fast MXU path for fc2
        y = jnp.dot(h, w2_ref[...], preferred_element_type=jnp.float32)      # (tM, H) f32

        @pl.when(f == 0)
        def _():
            acc_ref[...] = y            # init by assignment: no zero store + reload

        @pl.when(f > 0)
        def _():
            acc_ref[...] += y

    @pl.when(f == nf - 1)
    def _():
        # Gate applied once, in f32, before the output-dtype cast.
        y_ref[...] = (acc_ref[...] * gate_ref[...]).astype(y_ref.dtype)


def moe_layer_forward(x_sbh, w1, w2, gate_weight, choosed_experts):
    """x_sbh: (S, B, H); w1: (E, H, F); w2: (E, F, H);
    gate_weight: (T, K) float; choosed_experts: (T, K) int32, T = S*B.
    Returns (output (T, H), mlp_bias=None)."""
    S, B, H = x_sbh.shape
    E, _, F = w1.shape
    K = choosed_experts.shape[1]
    T = S * B
    TK = T * K
    x = x_sbh.reshape(T, H)
    act_itemsize = jnp.dtype(x.dtype).itemsize
    w_itemsize = jnp.dtype(w1.dtype).itemsize

    # ---- tile sizes re-derived from device VMEM (v7x: 64 MiB, v5e/v6e: 128 MiB) ----
    try:
        vmem_cap = int(pltpu.get_tpu_info().vmem_capacity_bytes)
    except Exception:
        vmem_cap = 64 * 1024 * 1024          # conservative (v7x per-TC); perf-only fallback
    tM, tF, vmem_limit = _pick_tiles(TK, E, H, F, act_itemsize, w_itemsize, vmem_cap)

    # ---- routing preprocessing: sort (token, k) pairs by expert into tile-aligned groups ----
    expert_flat = choosed_experts.reshape(TK).astype(jnp.int32)
    gate_flat = gate_weight.reshape(TK).astype(jnp.float32)

    order = jnp.argsort(expert_flat)                       # pair index, grouped by expert
    sorted_expert = expert_flat[order]

    counts = jnp.bincount(expert_flat, length=E).astype(jnp.int32)
    padded_counts = ((counts + tM - 1) // tM) * tM         # tile-aligned (0 stays 0)
    counts_start = jnp.concatenate([jnp.zeros((1,), jnp.int32), jnp.cumsum(counts)[:-1]])
    padded_start = jnp.concatenate([jnp.zeros((1,), jnp.int32), jnp.cumsum(padded_counts)[:-1]])

    rank_in_group = jnp.arange(TK, dtype=jnp.int32) - counts_start[sorted_expert]
    padded_pos = padded_start[sorted_expert] + rank_in_group          # row in padded layout

    M_PAD = _round_up(TK + min(E, TK) * (tM - 1), tM)                 # static upper bound
    num_m_tiles = M_PAD // tM

    # Per-padded-row source pair (small 1-D scatter); all (M_PAD, H)-sized work is a gather.
    pair_at_row = jnp.zeros((M_PAD,), jnp.int32).at[padded_pos].set(order)
    x_sorted = jnp.take(x, pair_at_row // K, axis=0)                  # (M_PAD, H) gather
    gate_sorted = jnp.take(gate_flat, pair_at_row, axis=0)[:, None]   # (M_PAD, 1) f32
    inv_pos = jnp.zeros((TK,), jnp.int32).at[order].set(padded_pos)   # pair -> padded row
    # TODO(synk): fuse this token gather into the kernel (pl.ANY x + per-row DMA gather) to
    # drop the remaining M_PAD*H HBM round-trip on bandwidth-bound v5e/v6e.

    # ---- per-token-tile schedule for scalar prefetch: owning expert + validity ----
    tile_begin = jnp.arange(num_m_tiles, dtype=jnp.int32) * tM
    padded_end = padded_start + padded_counts
    in_grp = (tile_begin[:, None] >= padded_start[None, :]) & \
             (tile_begin[:, None] < padded_end[None, :])
    tile_expert_raw = jnp.argmax(in_grp, axis=1).astype(jnp.int32)
    total_padded = jnp.sum(padded_counts)
    tile_valid = (tile_begin < total_padded).astype(jnp.int32)
    last_valid_tile = jnp.maximum(total_padded // tM - 1, 0)
    # Trailing dead tiles reuse the last expert id; together with the f*valid index gating
    # below they issue at most one extra weight-block DMA in total.
    tile_expert = jnp.where(tile_valid == 1, tile_expert_raw,
                            tile_expert_raw[last_valid_tile]).astype(jnp.int32)

    cost = pl.CostEstimate(
        flops=int(4 * M_PAD * H * F),                   # two matmuls, 2 flops/MAC (upper bound)
        transcendentals=int(M_PAD * F),                 # gelu
        bytes_accessed=int(2 * E * H * F * w_itemsize + (2 * M_PAD + TK) * H * act_itemsize),
    )

    y_sorted = pl.pallas_call(
        _grouped_mlp_kernel,
        out_shape=jax.ShapeDtypeStruct((M_PAD, H), x.dtype),
        grid_spec=pltpu.PrefetchScalarGridSpec(
            num_scalar_prefetch=2,
            grid=(num_m_tiles, F // tF),
            in_specs=[
                # Dead tiles pin every input block index -> no fresh DMA for them.
                pl.BlockSpec((tM, H), lambda m, f, te, tv: (m * tv[m], 0)),               # token tile
                pl.BlockSpec((tM, 1), lambda m, f, te, tv: (m * tv[m], 0)),               # gate tile
                pl.BlockSpec((None, H, tF), lambda m, f, te, tv: (te[m], 0, f * tv[m])),  # W1[expert]
                pl.BlockSpec((None, tF, H), lambda m, f, te, tv: (te[m], f * tv[m], 0)),  # W2[expert]
            ],
            out_specs=pl.BlockSpec((tM, H), lambda m, f, te, tv: (m, 0)),
            scratch_shapes=[pltpu.VMEM((tM, H), jnp.float32)],
        ),
        compiler_params=pltpu.CompilerParams(
            dimension_semantics=("parallel", "arbitrary"),   # token tiles split across TCs on v7x
            vmem_limit_bytes=vmem_limit,
        ),
        cost_estimate=cost,
    )(tile_expert, tile_valid, x_sorted, gate_sorted, w1, w2)

    # ---- un-permute: gather each (token, k) pair's row and sum over K (gate already applied) ----
    y_pairs = jnp.take(y_sorted, inv_pos, axis=0)                      # (TK, H)
    out = y_pairs.reshape(T, K, H).astype(jnp.float32).sum(axis=1).astype(x.dtype)
    # mlp_bias: grouped-GEMM experts have no bias -> None (matches Megatron path)
    return out, None


def _reference(x_sbh, w1, w2, gate_weight, choosed_experts):
    S, B, H = x_sbh.shape
    E = w1.shape[0]
    x = x_sbh.reshape(S * B, H)
    onehot = jax.nn.one_hot(choosed_experts, E, dtype=jnp.float32)
    comb = jnp.einsum('tk,tke->te', gate_weight.astype(jnp.float32), onehot)
    h = jax.nn.gelu(jnp.einsum('th,ehf->etf', x, w1), approximate=True)
    y = jnp.einsum('etf,efh->eth', h, w2)
    return jnp.einsum('te,eth->th', comb, y).astype(x.dtype)


if __name__ == "__main__":
    # Small shapes implied by the module: tokens=8, batch=2, hidden=32
    num_tokens, batch_size, hidden_size = 8, 2, 32
    ffn_hidden_size, num_experts, topk = 64, 4, 2
    S, B, H, F, E, K = num_tokens, batch_size, hidden_size, ffn_hidden_size, num_experts, topk
    T = S * B

    key = jax.random.PRNGKey(0)
    k_x, k_w1, k_w2, k_gate, k_sel = jax.random.split(key, 5)

    x_sbh = jax.random.normal(k_x, (S, B, H), dtype=jnp.float32)
    # Deterministic synthetic expert weights (ctx.weights[0][e], ctx._weight[e])
    w1 = jax.random.normal(k_w1, (E, H, F), dtype=jnp.float32) * (1.0 / jnp.sqrt(H))
    w2 = jax.random.normal(k_w2, (E, F, H), dtype=jnp.float32) * (1.0 / jnp.sqrt(F))
    # Routing info (ctx.gate_weight, ctx.choosed_experts)
    gate_logits = jax.random.normal(k_gate, (T, K), dtype=jnp.float32)
    gate_weight = jax.nn.softmax(gate_logits, axis=-1)
    choosed_experts = jax.random.randint(k_sel, (T, K), 0, E, dtype=jnp.int32)

    out, mlp_bias = moe_layer_forward(x_sbh, w1, w2, gate_weight, choosed_experts)
    out = jax.block_until_ready(out)

    ref = _reference(x_sbh, w1, w2, gate_weight, choosed_experts)
    assert out.shape == (T, H)
    assert mlp_bias is None
    assert jnp.allclose(out, ref, atol=1e-4, rtol=1e-4), "mismatch vs reference"

    print("KERNEL_OK")
</pallas_src>

<mosaic_0001>
module attributes {stable_mosaic.version = 11 : i64} {
  func.func @_grouped_mlp_kernel(%arg0: i32, %arg1: i32, %arg2: memref<5xi32, #tpu.memory_space<smem>>, %arg3: memref<5xi32, #tpu.memory_space<smem>>, %arg4: memref<32x32xf32, #tpu.memory_space<vmem>>, %arg5: memref<32x1xf32, #tpu.memory_space<vmem>>, %arg6: memref<1x32x64xf32, #tpu.memory_space<vmem>>, %arg7: memref<1x64x32xf32, #tpu.memory_space<vmem>>, %arg8: memref<32x32xf32, #tpu.memory_space<vmem>>, %arg9: memref<32x32xf32, #tpu.memory_space<vmem>>) attributes {dimension_semantics = [#tpu.dimension_semantics<parallel>, #tpu.dimension_semantics<arbitrary>], iteration_bounds = array<i64: 5, 1>, scalar_prefetch = 2 : i64, scratch_operands = 1 : i64, tpu.core_type = #tpu.core_type<tc>, window_params = [{transform_indices = @transform_0, window_bounds = array<i64: 32, 32>}, {transform_indices = @transform_1, window_bounds = array<i64: 32, 1>}, {transform_indices = @transform_2, window_bounds = array<i64: 1, 32, 64>}, {transform_indices = @transform_3, window_bounds = array<i64: 1, 64, 32>}, {transform_indices = @transform_4, window_bounds = array<i64: 32, 32>}]} {
    %0 = arith.index_cast %arg0 : i32 to index
    %1 = memref.load %arg3[%0] : memref<5xi32, #tpu.memory_space<smem>>
    %c1_i32 = arith.constant 1 : i32
    %2 = arith.cmpi eq, %1, %c1_i32 : i32
    %c0_i32 = arith.constant 0 : i32
    %3 = arith.cmpi eq, %arg1, %c0_i32 : i32
    %true = arith.constant true
    %4 = arith.xori %2, %true : i1
    %5 = arith.andi %3, %4 : i1
    %6 = arith.extui %5 : i1 to i32
    %c0_i32_0 = arith.constant 0 : i32
    %7 = arith.cmpi ne, %6, %c0_i32_0 : i32
    scf.if %7 {
      %cst = arith.constant 0.000000e+00 : f32
      %13 = vector.broadcast %cst : f32 to vector<32x32xf32>
      %c0 = arith.constant 0 : index
      %c0_4 = arith.constant 0 : index
      %14 = vector.load %arg9[%c0, %c0_4] : memref<32x32xf32, #tpu.memory_space<vmem>>, vector<32x32xf32>
      tpu.vector_store %arg9[%c0, %c0_4], %13 {strides = array<i32>} : memref<32x32xf32, #tpu.memory_space<vmem>>, vector<32x32xf32>,
    } else {
    }
    %8 = arith.extui %2 : i1 to i32
    %c0_i32_1 = arith.constant 0 : i32
    %9 = arith.cmpi ne, %8, %c0_i32_1 : i32
    scf.if %9 {
      %c0 = arith.constant 0 : index
      %c0_4 = arith.constant 0 : index
      %13 = vector.load %arg4[%c0, %c0_4] : memref<32x32xf32, #tpu.memory_space<vmem>>, vector<32x32xf32>
      %c0_5 = arith.constant 0 : index
      %c0_6 = arith.constant 0 : index
      %c0_7 = arith.constant 0 : index
      %14 = vector.load %arg6[%c0_5, %c0_6, %c0_7] : memref<1x32x64xf32, #tpu.memory_space<vmem>>, vector<1x32x64xf32>
      %15 = vector.shape_cast %14 : vector<1x32x64xf32> to vector<32x64xf32>
      %cst = arith.constant dense<0.000000e+00> : vector<32x64xf32>
      %16 = tpu.matmul %13, %15, %cst {dimension_numbers = #tpu.dot_dimension_numbers<[1], [0], [0], [1], [0, 0, 1, 1], [], []>} : vector<32x32xf32>, vector<32x64xf32>, vector<32x64xf32> -> vector<32x64xf32>
      %17 = arith.mulf %16, %16 : vector<32x64xf32>
      %18 = arith.mulf %16, %17 : vector<32x64xf32>
      %cst_8 = arith.constant 4.471500e-02 : f32
      %19 = vector.broadcast %cst_8 : f32 to vector<32x64xf32>
      %20 = arith.mulf %19, %18 : vector<32x64xf32>
      %21 = arith.addf %16, %20 : vector<32x64xf32>
      %cst_9 = arith.constant 0.797884583 : f32
      %22 = vector.broadcast %cst_9 : f32 to vector<32x64xf32>
      %23 = arith.mulf %22, %21 : vector<32x64xf32>
      %24 = math.tanh %23 : vector<32x64xf32>
      %cst_10 = arith.constant 1.000000e+00 : f32
      %25 = vector.broadcast %cst_10 : f32 to vector<32x64xf32>
      %26 = arith.addf %25, %24 : vector<32x64xf32>
      %cst_11 = arith.constant 5.000000e-01 : f32
      %27 = vector.broadcast %cst_11 : f32 to vector<32x64xf32>
      %28 = arith.mulf %27, %26 : vector<32x64xf32>
      %29 = arith.mulf %16, %28 : vector<32x64xf32>
      %c0_12 = arith.constant 0 : index
      %c0_13 = arith.constant 0 : index
      %c0_14 = arith.constant 0 : index
      %30 = vector.load %arg7[%c0_12, %c0_13, %c0_14] : memref<1x64x32xf32, #tpu.memory_space<vmem>>, vector<1x64x32xf32>
      %31 = vector.shape_cast %30 : vector<1x64x32xf32> to vector<64x32xf32>
      %cst_15 = arith.constant dense<0.000000e+00> : vector<32x32xf32>
      %32 = tpu.matmul %29, %31, %cst_15 {dimension_numbers = #tpu.dot_dimension_numbers<[1], [0], [0], [1], [0, 0, 1, 1], [], []>} : vector<32x64xf32>, vector<64x32xf32>, vector<32x32xf32> -> vector<32x32xf32>
      %c0_i32_16 = arith.constant 0 : i32
      %33 = arith.cmpi eq, %arg1, %c0_i32_16 : i32
      %34 = arith.extui %33 : i1 to i32
      %c0_i32_17 = arith.constant 0 : i32
      %35 = arith.cmpi ne, %34, %c0_i32_17 : i32
      scf.if %35 {
        %c0_20 = arith.constant 0 : index
        %c0_21 = arith.constant 0 : index
        %39 = vector.load %arg9[%c0_20, %c0_21] : memref<32x32xf32, #tpu.memory_space<vmem>>, vector<32x32xf32>
        tpu.vector_store %arg9[%c0_20, %c0_21], %32 {strides = array<i32>} : memref<32x32xf32, #tpu.memory_space<vmem>>, vector<32x32xf32>,
      } else {
      }
      %c0_i32_18 = arith.constant 0 : i32
      %36 = arith.cmpi sgt, %arg1, %c0_i32_18 : i32
      %37 = arith.extui %36 : i1 to i32
      %c0_i32_19 = arith.constant 0 : i32
      %38 = arith.cmpi ne, %37, %c0_i32_19 : i32
      scf.if %38 {
        %c0_20 = arith.constant 0 : index
        %c0_21 = arith.constant 0 : index
        %39 = vector.load %arg9[%c0_20, %c0_21] : memref<32x32xf32, #tpu.memory_space<vmem>>, vector<32x32xf32>
        %40 = arith.addf %39, %32 : vector<32x32xf32>
        %c0_22 = arith.constant 0 : index
        %c0_23 = arith.constant 0 : index
        %41 = vector.load %arg9[%c0_22, %c0_23] : memref<32x32xf32, #tpu.memory_space<vmem>>, vector<32x32xf32>
        tpu.vector_store %arg9[%c0_22, %c0_23], %40 {strides = array<i32>} : memref<32x32xf32, #tpu.memory_space<vmem>>, vector<32x32xf32>,
      } else {
      }
    } else {
    }
    %c0_i32_2 = arith.constant 0 : i32
    %10 = arith.cmpi eq, %arg1, %c0_i32_2 : i32
    %11 = arith.extui %10 : i1 to i32
    %c0_i32_3 = arith.constant 0 : i32
    %12 = arith.cmpi ne, %11, %c0_i32_3 : i32
    scf.if %12 {
      %c0 = arith.constant 0 : index
      %c0_4 = arith.constant 0 : index
      %13 = vector.load %arg9[%c0, %c0_4] : memref<32x32xf32, #tpu.memory_space<vmem>>, vector<32x32xf32>
      %c0_5 = arith.constant 0 : index
      %c0_6 = arith.constant 0 : index
      %14 = vector.load %arg5[%c0_5, %c0_6] : memref<32x1xf32, #tpu.memory_space<vmem>>, vector<32x1xf32>
      %15 = vector.broadcast %14 : vector<32x1xf32> to vector<32x32xf32>
      %16 = arith.mulf %13, %15 : vector<32x32xf32>
      %c0_7 = arith.constant 0 : index
      %c0_8 = arith.constant 0 : index
      %17 = vector.load %arg8[%c0_7, %c0_8] : memref<32x32xf32, #tpu.memory_space<vmem>>, vector<32x32xf32>
      tpu.vector_store %arg8[%c0_7, %c0_8], %16 {strides = array<i32>} : memref<32x32xf32, #tpu.memory_space<vmem>>, vector<32x32xf32>,
    } else {
    }
    return
  }
  func.func @transform_0(%arg0: i32, %arg1: i32, %arg2: memref<5xi32, #tpu.memory_space<smem>>, %arg3: memref<5xi32, #tpu.memory_space<smem>>) -> (i32, i32) {
    %0 = arith.index_cast %arg0 : i32 to index
    %1 = memref.load %arg3[%0] : memref<5xi32, #tpu.memory_space<smem>>
    %2 = arith.muli %arg0, %1 : i32
    %c0_i32 = arith.constant 0 : i32
    %c0_i32_0 = arith.constant 0 : i32
    return %2, %c0_i32 : i32, i32
  }
  func.func @transform_1(%arg0: i32, %arg1: i32, %arg2: memref<5xi32, #tpu.memory_space<smem>>, %arg3: memref<5xi32, #tpu.memory_space<smem>>) -> (i32, i32) {
    %0 = arith.index_cast %arg0 : i32 to index
    %1 = memref.load %arg3[%0] : memref<5xi32, #tpu.memory_space<smem>>
    %2 = arith.muli %arg0, %1 : i32
    %c0_i32 = arith.constant 0 : i32
    %c0_i32_0 = arith.constant 0 : i32
    return %2, %c0_i32 : i32, i32
  }
  func.func @transform_2(%arg0: i32, %arg1: i32, %arg2: memref<5xi32, #tpu.memory_space<smem>>, %arg3: memref<5xi32, #tpu.memory_space<smem>>) -> (i32, i32, i32) {
    %0 = arith.index_cast %arg0 : i32 to index
    %1 = memref.load %arg2[%0] : memref<5xi32, #tpu.memory_space<smem>>
    %2 = arith.index_cast %arg0 : i32 to index
    %3 = memref.load %arg3[%2] : memref<5xi32, #tpu.memory_space<smem>>
    %4 = arith.muli %arg1, %3 : i32
    %c0_i32 = arith.constant 0 : i32
    %c0_i32_0 = arith.constant 0 : i32
    return %1, %c0_i32, %4 : i32, i32, i32
  }
  func.func @transform_3(%arg0: i32, %arg1: i32, %arg2: memref<5xi32, #tpu.memory_space<smem>>, %arg3: memref<5xi32, #tpu.memory_space<smem>>) -> (i32, i32, i32) {
    %0 = arith.index_cast %arg0 : i32 to index
    %1 = memref.load %arg2[%0] : memref<5xi32, #tpu.memory_space<smem>>
    %2 = arith.index_cast %arg0 : i32 to index
    %3 = memref.load %arg3[%2] : memref<5xi32, #tpu.memory_space<smem>>
    %4 = arith.muli %arg1, %3 : i32
    %c0_i32 = arith.constant 0 : i32
    %c0_i32_0 = arith.constant 0 : i32
    return %1, %4, %c0_i32 : i32, i32, i32
  }
  func.func @transform_4(%arg0: i32, %arg1: i32, %arg2: memref<5xi32, #tpu.memory_space<smem>>, %arg3: memref<5xi32, #tpu.memory_space<smem>>) -> (i32, i32) {
    %c0_i32 = arith.constant 0 : i32
    %c0_i32_0 = arith.constant 0 : i32
    return %arg0, %c0_i32 : i32, i32
  }
}

</mosaic_0001>

<bundles_post_ra>
// kernel: tpu_custom_call.1
= control target key start
LH: loop header
LB: loop body
LE: loop exit
PB: predicated region body
PF: predicated region fallthrough
CT: control target
= control target key end

     0   :  { %s845_s27 = smov [#allocation4]   ;;  %s846_s28 = smov [#allocation5]   ;;  %s979_s0 = inlined_call_operand.vmem [shape: s32[5], index: 0, kind: input, shape index: {}]   ;;  %s980_s2 = inlined_call_operand.vmem [shape: f32[160,32], index: 2, kind: input, shape index: {}]   ;;  %s981_s3 = inlined_call_operand.vmem [shape: f32[160,1], index: 3, kind: input, shape index: {}]   ;;  %s982_s4 = inlined_call_operand.vmem [shape: f32[4,32,64], index: 4, kind: input, shape index: {}]   ;;  %s983_s5 = inlined_call_operand.vmem [shape: f32[4,64,32], index: 5, kind: input, shape index: {}]   ;;  %s984_s6 = inlined_call_operand.vmem [shape: f32[160,32], index: 6, kind: output, shape index: {}]   ;;  %s985_s1 = inlined_call_operand.vmem [shape: s32[5], index: 1, kind: input, shape index: {}]  }
   0x1   :  { %s12_s23 = sshll.u32 %s979_s0, 4  ;;  %s17_s26 = sshll.u32 %s985_s1, 4  ;;  %s13_s23 = int_to_ptr.vmem [resolvable:$true] %s12_s23  ;;  %s18_s26 = int_to_ptr.vmem [resolvable:$true] %s17_s26 }
   0x2   :  { %15 = dma.vmem_to_smem %s13_s23, 16, %s845_s27, [#allocation3] }
   0x3   :  { %20 = dma.vmem_to_smem %s18_s26, 16, %s846_s28, [#allocation3] }
   0x4   :  { %831 = dma.done.wait [#allocation3], 32 }
   0x5   :  { %832 = vsyncadd [#allocation3], 4294967264 }
   0x6   :  { %23 = sfence }
   0x7   :  { %s890_s29 = smov 0   ;;  %s892_s30 = smov 0  }
   0x8   :  { %s894_s7 = smov 0  }
   0x9 LB: > { %s41_s0 = sadd.s32 1, %s839_s30  ;;  %p719_p0 = scmp.ge.s32.totalorder %s843_s7, 1  ;;  %s843_s7 = sphi %s894_s7, %s29_s7   ;;  %s839_s30 = sphi %s892_s30, %s987_s30   ;;  %s835_s29 = sphi %s890_s29, %s986_s29  }
   0xa   : > { %p43_p1 = scmp.ge.s32.totalorder %s41_s0, 5  ;;  %p273_p2 = scmp.lt.s32.totalorder %s843_s7, 6 }
   0xc   : > { %s989_s0 = smov (%p43_p1, %s41_s0), 0  ;;  %p274_p3 = pnand %p719_p0, %p273_p2 }
   0xd   : > { %s331_s1 = sld [smem:[#allocation5 + %s835_s29]] (!%p274_p3)  ;;  %s728_s8 = sshll.u32 (!%p274_p3), %s835_s29, 2 }
   0xe   : > { %277 = sbr.rel (%p274_p3) target bundleno = 482 (0x1e2), region = 36  ;;  %s341_s9 = sld [smem:[#allocation5 + %s835_s29]] (!%p274_p3) }
   0xf   : > { %p382_p4 = scmp.lt.s32.totalorder (!%p274_p3), %s728_s8, 19  ;;  %s351_s10 = sld [smem:[#allocation4 + %s835_s29]] (!%p274_p3) }
  0x10   : > { %s365_s11 = sld [smem:[#allocation4 + %s835_s29]] (!%p274_p3) }
  0x11   : > { %s908_s12 = sld [smem:[#allocation5 + %s835_s29]] (!%p274_p3) }
  0x13   : > { %s991_s8 = smov (!%p382_p4, %s728_s8), 19  ;;  %s332_s13 = smul.u32 %s835_s29, %s331_s1 }
  0x14   : > { %s729_s14 = sshll.u32 %s991_s8, 3  ;;  %s342_s15 = smul.u32 %s835_s29, %s341_s9 }
  0x15   : > { %s913_s18 = scalar_lea.vmem %s984_s6, %s729_s14  ;;  %s720_s19 = sshll.u32 %s332_s13, 2 }
  0x16   : > { %p354_p5 = scmp.lt.s32.totalorder %s351_s10, 3  ;;  %p334_p6 = scmp.lt.s32.totalorder %s720_s19, 19 }
  0x17   : > { %s722_s20 = sshll.u32 %s342_s15, 2  ;;  %p369_p8 = scmp.lt.s32.totalorder %s365_s11, 3 }
  0x18   : > { %p344_p7 = scmp.lt.s32.totalorder %s722_s20, 19  ;;  %s993_s19 = smov (!%p334_p6, %s720_s19), 19 }
  0x19   : > { %s721_s21 = sshll.u32 %s993_s19, 3  ;;  %p390_p9 = scmp.ne.s32.totalorder %s908_s12, 1 }
  0x1a   : > { %s995_s20 = smov (!%p344_p7, %s722_s20), 19  ;;  %s919_s24 = scalar_lea.vmem %s980_s2, %s721_s21  ;;  %vm395_vm0 = vcmask (%p390_p9), 261120   ;;  %v847_v0 = vmov (%p390_p9), 0.0  }
  0x1b   : > { %s723_s25 = sshll.u32 %s995_s20, 3  ;;  %s997_s10 = smov (!%p354_p5, %s351_s10), 3  ;;  %396 = vst.msk [vmem:[#allocation2] sm:$0xff] (%p390_p9), %vm395_vm0, %v847_v0 }
  0x1c   : > { %s924_s28 = scalar_lea.vmem %s981_s3, %s723_s25  ;;  %s999_s11 = smov (!%p369_p8, %s365_s11), 3  ;;  %397 = vst.msk [vmem:[#allocation2 + $0x8] sm:$0xff] (%p390_p9), %vm395_vm0, %v847_v0 }
  0x1d   : > { %s742_s29 = sshll.u32 %s997_s10, 5  ;;  %s743_s13 = sshll.u32 %s999_s11, 6  ;;  %398 = vst.msk [vmem:[#allocation2 + $0x10] sm:$0xff] (%p390_p9), %vm395_vm0, %v847_v0 }
  0x1e   : > { %s361_s9 = scalar_lea.vmem %s982_s4, %s742_s29  ;;  %s932_s16 = scalar_lea.vmem %s983_s5, %s743_s13  ;;  %399 = vst.msk [vmem:[#allocation2 + $0x18] sm:$0xff] (%p390_p9), %vm395_vm0, %v847_v0 }
  0x1f   : > { %394 = sbr.rel (!%p390_p9) target bundleno = 36 (0x24), region = 40 }
  0x24 PF: > { %402 = sbr.rel (%p390_p9) target bundleno = 353 (0x161), region = 44 }
  0x29   : > { %v410_v1 = vld [vmem:[%s361_s9 + $0x18] sm:$0xff]  ;;  %v409_v2 = vld [vmem:[%s361_s9 + $0x10] sm:$0xff]  ;;  %v408_v3 = vld [vmem:[%s361_s9 + $0x8] sm:$0xff]  ;;  %vm411_vm1 = vcmask 261120   ;;  %vm497_vm2 = vcmask 523264  }
  0x2a   : > { %436 = vmatpush.msra.mxu0 %v410_v1  ;;  %745 = vmatpush.msra.mxu3 %v410_v1  ;;  %v407_v4 = vld [vmem:[%s361_s9] sm:$0xff]  ;;  %v404_v6 = vld [vmem:[%s919_s24 + $0x8] sm:$0xff]  ;;  %v405_v7 = vld [vmem:[%s919_s24 + $0x10] sm:$0xff] }
  0x2b   : > { %v403_v5 = vld [vmem:[%s919_s24] sm:$0xff]  ;;  %v406_v8 = vld [vmem:[%s919_s24 + $0x18] sm:$0xff]  ;;  %v495_v10 = vld [vmem:[%s932_s16 + $0x30] sm:$0xff] }
  0x2c   : > { %437 = vmatpush.msra.mxu0 %v409_v2  ;;  %746 = vmatpush.msra.mxu3 %v409_v2  ;;  %v496_v9 = vld [vmem:[%s932_s16 + $0x38] sm:$0xff]  ;;  %v494_v11 = vld [vmem:[%s932_s16 + $0x28] sm:$0xff]  ;;  %v493_v12 = vld [vmem:[%s932_s16 + $0x20] sm:$0xff] }
  0x2d   : > { %518 = vmatpush.msra.mxu1 %v496_v9  ;;  %749 = vmatpush.msra.mxu2 %v496_v9  ;;  %v492_v13 = vld [vmem:[%s932_s16 + $0x18] sm:$0xff]  ;;  %v491_v14 = vld [vmem:[%s932_s16 + $0x10] sm:$0xff]  ;;  %v490_v15 = vld [vmem:[%s932_s16 + $0x8] sm:$0xff] }
  0x2e   : > { %438 = vmatpush.msra.mxu0 %v408_v3  ;;  %747 = vmatpush.msra.mxu3 %v408_v3  ;;  %v489_v16 = vld [vmem:[%s932_s16] sm:$0xff] }
  0x2f   : > { %519 = vmatpush.msra.mxu1 %v495_v10  ;;  %750 = vmatpush.msra.mxu2 %v495_v10 }
  0x30   : > { %439 = vmatpush.msra.mxu0 %v407_v4  ;;  %748 = vmatpush.msra.mxu3 %v407_v4 }
  0x31   : > { %732 = vmatmul.msk.f32.vlgmr.msra.gmra.mxu0 %vm411_vm1, %v403_v5  ;;  %733 = vmatmul.msk.f32.vlgmr.msra.gmra.mxu3 %vm411_vm1, %v404_v6 }
  0x32   : > { %520 = vmatpush.msra.mxu1 %v494_v11  ;;  %751 = vmatpush.msra.mxu2 %v494_v11 }
  0x34   : > { %521 = vmatpush.msra.mxu1 %v493_v12  ;;  %752 = vmatpush.msra.mxu2 %v493_v12 }
  0x36   : > { %522 = vmatpush.msra.mxu1 %v492_v13  ;;  %753 = vmatpush.msra.mxu2 %v492_v13 }
  0x38   : > { %523 = vmatpush.msra.mxu1 %v491_v14  ;;  %754 = vmatpush.msra.mxu2 %v491_v14 }
  0x39   : > { %734 = vmatmul.msk.f32.gmra.mxu3 %vm411_vm1, %v405_v7 }
  0x3a   : > { %524 = vmatpush.msra.mxu1 %v490_v15  ;;  %755 = vmatpush.msra.mxu2 %v490_v15 }
  0x3c   : > { %525 = vmatpush.msra.mxu1 %v489_v16  ;;  %756 = vmatpush.msra.mxu2 %v489_v16 }
  0x41   : > { %735 = vmatmul.msk.f32.gmra.mxu3 %vm411_vm1, %v406_v8 }
  0xae   : > { %v441_v17 = vpop.f32.mrf.mxu0 }
  0xaf   : > { %v453_v18 = vmul.f32 %v441_v17, %v441_v17 }
  0xb1   : > { %v457_v19 = vmul.f32 %v453_v18, %v441_v17 }
  0xb3   : > { %v461_v20 = vmul.f32 0.044715, %v457_v19 }
  0xb4   : > { %v444_v21 = vpop.f32.mrf.mxu3 }
  0xb5   : > { %v465_v22 = vadd.f32 %v461_v20, %v441_v17  ;;  %v454_v23 = vmul.f32 %v444_v21, %v444_v21 }
  0xb7   : > { %v469_v24 = vmul.f32 0.7978846, %v465_v22  ;;  %v458_v25 = vmul.f32 %v454_v23, %v444_v21 }
  0xb9   : > { %785 = vtanh.f32 %v469_v24  ;;  %v462_v26 = vmul.f32 0.044715, %v458_v25 }
  0xbb   : > { %v466_v27 = vadd.f32 %v462_v26, %v444_v21 }
  0xbc   : > { %v447_v28 = vpop.f32.mrf.mxu3 }
  0xbd   : > { %v470_v29 = vmul.f32 0.7978846, %v466_v27  ;;  %v455_v30 = vmul.f32 %v447_v28, %v447_v28 }
  0xbf   : > { %v786_v31 = vpop.eup %785  ;;  %787 = vtanh.f32 %v470_v29  ;;  %v459_v32 = vmul.f32 %v455_v30, %v447_v28 }
  0xc0   : > { %v477_v33 = vadd.f32 1.0, %v786_v31 }
  0xc1   : > { %v463_v34 = vmul.f32 0.044715, %v459_v32 }
  0xc2   : > { %v481_v35 = vmul.f32 0.5, %v477_v33 }
  0xc3   : > { %v467_v36 = vadd.f32 %v463_v34, %v447_v28 }
  0xc4   : > { %v485_v37 = vmul.f32 %v481_v35, %v441_v17  ;;  %v450_v38 = vpop.f32.mrf.mxu3 }
  0xc5   : > { %v788_v39 = vpop.eup %787  ;;  %v471_v40 = vmul.f32 0.7978846, %v467_v36  ;;  %v456_v41 = vmul.f32 %v450_v38, %v450_v38 }
  0xc6   : > { %736 = vmatmul.msk.f32.vlgmr.msra.gmra.mxu1 %vm497_vm2, %v485_v37  ;;  %v478_v42 = vadd.f32 1.0, %v788_v39 }
  0xc7   : > { %789 = vtanh.f32 %v471_v40  ;;  %v460_v43 = vmul.f32 %v456_v41, %v450_v38 }
  0xc8   : > { %v482_v44 = vmul.f32 0.5, %v478_v42 }
  0xc9   : > { %v464_v45 = vmul.f32 0.044715, %v460_v43 }
  0xca   : > { %v486_v47 = vmul.f32 %v482_v44, %v444_v21 }
  0xcb   : > { %v468_v46 = vadd.f32 %v464_v45, %v450_v38 }
  0xcd   : > { %v790_v48 = vpop.eup %789  ;;  %v472_v49 = vmul.f32 0.7978846, %v468_v46 }
  0xce   : > { %737 = vmatmul.msk.f32.gmra.mxu1 %vm497_vm2, %v486_v47  ;;  %v479_v50 = vadd.f32 1.0, %v790_v48 }
  0xcf   : > { %791 = vtanh.f32 %v472_v49 }
  0xd0   : > { %v483_v51 = vmul.f32 0.5, %v479_v50 }
  0xd2   : > { %v487_v52 = vmul.f32 %v483_v51, %v447_v28 }
  0xd4   : > { %738 = vmatmul.msk.f32.vlgmr.msra.gmra.mxu2 %vm497_vm2, %v487_v52 }
  0xd5   : > { %v792_v53 = vpop.eup %791 }
  0xd6   : > { %v480_v54 = vadd.f32 1.0, %v792_v53 }
  0xd8   : > { %v484_v55 = vmul.f32 0.5, %v480_v54 }
  0xda   : > { %v488_v56 = vmul.f32 %v484_v55, %v450_v38 }
  0xdc   : > { %739 = vmatmul.msk.f32.gmra.mxu2 %vm497_vm2, %v488_v56 }
 0x143   : > { %v527_v57 = vpop.f32.mrf.mxu1 }
 0x144   : > { %542 = vst.msk [vmem:[#allocation2] sm:$0xff] %vm411_vm1, %v527_v57 }
 0x14b   : > { %v530_v58 = vpop.f32.mrf.mxu1 }
 0x14c   : > { %543 = vst.msk [vmem:[#allocation2 + $0x8] sm:$0xff] %vm411_vm1, %v530_v58 }
 0x157   : > { %v533_v59 = vpop.f32.mrf.mxu2 }
 0x158   : > { %544 = vst.msk [vmem:[#allocation2 + $0x10] sm:$0xff] %vm411_vm1, %v533_v59 }
 0x15f   : > { %v536_v60 = vpop.f32.mrf.mxu2 }
 0x160   : > { %545 = vst.msk [vmem:[#allocation2 + $0x18] sm:$0xff] %vm411_vm1, %v536_v60 }
 0x161 PF: > { %v571_v61 = vld [vmem:[%s924_s28 + $0x10] sm:$0xff]  ;;  %v569_v62 = vld [vmem:[%s924_s28] sm:$0xff]  ;;  %v848_v63 = vmov 0   ;;  %v572_v0 = vld [vmem:[%s924_s28 + $0x18] sm:$0xff]  ;;  %vm597_vm3 = vcmask 261120  }
 0x162   : > { %794 = vset.pattern.permute.xlu1 %v848_v63  ;;  %793 = vset.pattern.permute.xlu0 %v848_v63  ;;  %v570_v1 = vld [vmem:[%s924_s28 + $0x8] sm:$0xff]  ;;  %v567_v2 = vld [vmem:[#allocation2 + $0x10] sm:$0xff]  ;;  %v565_v3 = vld [vmem:[#allocation2] sm:$0xff] }
 0x163   : > { %585 = vperm.xlu1 %794, %v571_v61   ;;  %575 = vperm.xlu0 %793, %v569_v62   ;;  %v566_v9 = vld [vmem:[#allocation2 + $0x8] sm:$0xff] }
 0x167   : > { %v568_v8 = vld [vmem:[#allocation2 + $0x18] sm:$0xff] }
 0x16b   : > { %590 = vperm.xlu1 %794, %v572_v0   ;;  %580 = vperm.xlu0 %793, %v570_v1  }
 0x1d5   : > { %v586_v4 = vpop.permute.xlu1 %585  ;;  %v576_v5 = vpop.permute.xlu0 %575 }
 0x1d6   : > { %v595_v6 = vmul.f32 %v586_v4, %v567_v2  ;;  %v593_v7 = vmul.f32 %v576_v5, %v565_v3 }
 0x1d8   : > { %600 = vst.msk [vmem:[%s913_s18 + $0x10] sm:$0xff] %vm597_vm3, %v595_v6 }
 0x1d9   : > { %598 = vst.msk [vmem:[%s913_s18] sm:$0xff] %vm597_vm3, %v593_v7 }
 0x1dd   : > { %v591_v10 = vpop.permute.xlu1 %590  ;;  %v581_v11 = vpop.permute.xlu0 %580 }
 0x1de   : > { %v596_v12 = vmul.f32 %v591_v10, %v568_v8  ;;  %v594_v13 = vmul.f32 %v581_v11, %v566_v9 }
 0x1e0   : > { %601 = vst.msk [vmem:[%s913_s18 + $0x18] sm:$0xff] %vm597_vm3, %v596_v12 }
 0x1e1   : > { %599 = vst.msk [vmem:[%s913_s18 + $0x8] sm:$0xff] %vm597_vm3, %v594_v13 }
 0x1e2 PF: > { %s29_s7 = sadd.s32 1, %s843_s7   ;;  %s986_s29 = smov %s839_s30 }
 0x1e3   : > { %p26_p10 = scmp.ge.s32.totalorder %s29_s7, 7   ;;  %s987_s30 = smov %s989_s0 }
 0x1e5   :  { %28 = sbr.rel (!%p26_p10) target bundleno = 9 (0x9), region = 95 }

</bundles_post_ra>
